<compile_context>
chip_gen: v7x
topology: tpu7x:2x2x1
jax: 0.10.0
libtpu: 0.0.40
codegen_flags: <defaults>
</compile_context>

<pallas_src>
import jax
import jax.numpy as jnp
from jax.experimental import pallas as pl
from jax.experimental.pallas import tpu as pltpu

LEAKY_RATE = 0.1


# ---------------------------------------------------------------------------
# JAX glue (no clean Pallas equivalent: data-dependent top-k and gathers).
# ---------------------------------------------------------------------------

def square_distance(src, dst):
    """src: (B,N,C), dst: (B,M,C) -> (B,N,M) squared distances."""
    dist = -2.0 * jnp.einsum("bnc,bmc->bnm", src, dst)
    dist = dist + jnp.sum(src ** 2, axis=-1)[:, :, None]
    dist = dist + jnp.sum(dst ** 2, axis=-1)[:, None, :]
    return dist


def knn_point(nsample, xyz, new_xyz):
    """For each point in new_xyz (B,S,C) return indices of nsample NN in xyz (B,N,C)."""
    # TODO(synk): KNN (dense (B,N1,N2) distance matrix + lax.top_k) stays in plain JAX;
    # for large N this should be chunked over the dst axis with a running top-k.
    sqrdists = square_distance(new_xyz, xyz)
    _, idx = jax.lax.top_k(-sqrdists, nsample)
    return idx  # (B, S, nsample)


def index_points_group(points, knn_idx):
    """points: (B,N,C), knn_idx: (B,S,K) -> (B,S,K,C). (reference path only)"""
    # TODO(synk): data-dependent gather stays in plain JAX (vmap indexing).
    return jax.vmap(lambda p, i: p[i])(points, knn_idx)


# ---------------------------------------------------------------------------
# Parameter packing: all layer weights + biases in one lane-padded f32 operand.
# ---------------------------------------------------------------------------

def _round_up(x, m):
    return ((x + m - 1) // m) * m


def _pack_params(layers):
    """layers: list of (W (co,ci), b (co,)) -> (packed (R, Cmax) f32, metas[(row, co, ci)])."""
    layers = [(jnp.asarray(w, jnp.float32), jnp.asarray(b, jnp.float32)) for w, b in layers]
    cmax = max(_round_up(w.shape[1] + 1, 128) for w, _ in layers)
    blocks, metas, row = [], [], 0
    for w, b in layers:
        co, ci = w.shape
        rpad = _round_up(co, 8)
        blk = jnp.zeros((rpad, cmax), jnp.float32)
        blk = blk.at[:co, :ci].set(w)
        blk = blk.at[:co, ci].set(b)                      # bias stored in column ci
        blocks.append(blk)
        metas.append((row, co, ci))
        row += rpad
    return jnp.concatenate(blocks, axis=0), metas


# ---------------------------------------------------------------------------
# Fused Pallas kernel: per-point MLP + WeightNet + weighted sum over K.
# Lane layout per (batch, n-tile) block: lane l = k*tn + j  <->  (neighbour k, point j).
# ---------------------------------------------------------------------------

def _make_cost_kernel(metas_mlp, metas_wn, K, tn, d1, d2, leaky_rate, has_p1):
    n_mlp = len(metas_mlp)

    def kernel(*refs):
        if has_p1:
            p1_ref, feat_ref, xyzg_ref, xyz1_ref, par_ref, out_ref = refs
        else:
            feat_ref, xyzg_ref, xyz1_ref, par_ref, out_ref = refs

        params = par_ref[...]                              # tiny (R, Cmax) f32, loaded once

        def layer_wb(meta):
            row, co, ci = meta
            w = params[row:row + co, :ci]
            b = params[row:row + co, ci:ci + 1]
            return w, b

        # Direction vectors: gathered neighbour xyz minus the K-tiled centre xyz.
        x1 = xyz1_ref[0]                                   # (3, tn)
        dirs = xyzg_ref[0] - jnp.concatenate([x1] * K, axis=1)   # (3, K*tn)

        # ----- feature path -----
        if n_mlp > 0:
            # First layer with weight split [W_p1 | W_p2 | W_dir]; p1 part once per tile.
            w1, b1 = layer_wb(metas_mlp[0])
            w1_p1 = w1[:, :d1]
            w1_p2 = w1[:, d1:d1 + d2]
            w1_d = w1[:, d1 + d2:d1 + d2 + 3]
            h_p1 = jnp.dot(w1_p1, p1_ref[0], preferred_element_type=jnp.float32) + b1
            h = (jnp.concatenate([h_p1] * K, axis=1)
                 + jnp.dot(w1_p2, feat_ref[0], preferred_element_type=jnp.float32)
                 + jnp.dot(w1_d, dirs, preferred_element_type=jnp.float32))
            h = jnp.maximum(h, leaky_rate * h)             # LeakyReLU
            for meta in metas_mlp[1:]:
                w, b = layer_wb(meta)
                h = jnp.dot(w, h, preferred_element_type=jnp.float32) + b
                h = jnp.maximum(h, leaky_rate * h)
        else:
            h = feat_ref[0]                                # stage 2: grouped stage-1 cost

        # ----- WeightNet on direction vectors (ReLU) -----
        g = dirs
        for meta in metas_wn:
            w, b = layer_wb(meta)
            g = jnp.dot(w, g, preferred_element_type=jnp.float32) + b
            g = jnp.maximum(g, 0.0)

        # Weighted sum over K neighbours (lane-aligned static slices, tn % 128 == 0).
        hg = h * g                                         # (c_out, K*tn)
        acc = hg[:, 0:tn]
        for k in range(1, K):
            acc = acc + hg[:, k * tn:(k + 1) * tn]
        out_ref[0] = acc.astype(out_ref.dtype)

    return kernel


def _fused_patch_cost(featg, xyzg, xyz1_p, params_packed, metas_mlp, metas_wn,
                      c_out, K, tn, p1=None, d1=0, d2=0, leaky_rate=LEAKY_RATE):
    """featg: (B, Cf, NT*K*tn), xyzg: (B, 3, NT*K*tn), xyz1_p: (B, 3, Np) -> (B, c_out, Np)."""
    B, _, Np = xyz1_p.shape
    NT = Np // tn
    has_p1 = p1 is not None

    kernel = _make_cost_kernel(metas_mlp, metas_wn, K, tn, d1, d2, leaky_rate, has_p1)

    in_specs = []
    inputs = []
    if has_p1:
        in_specs.append(pl.BlockSpec((1, p1.shape[1], tn), lambda b, n: (b, 0, n)))
        inputs.append(p1)
    in_specs += [
        pl.BlockSpec((1, featg.shape[1], K * tn), lambda b, n: (b, 0, n)),
        pl.BlockSpec((1, 3, K * tn), lambda b, n: (b, 0, n)),
        pl.BlockSpec((1, 3, tn), lambda b, n: (b, 0, n)),
        pl.BlockSpec(params_packed.shape, lambda b, n: (0, 0)),
    ]
    inputs += [featg, xyzg, xyz1_p, params_packed]

    # Advisory cost estimate so XLA schedules the surrounding gathers well.
    flops_per = sum(2 * co * ci for (_, co, ci) in (metas_mlp + metas_wn)) + 2 * c_out
    flops = int(B * Np * K * flops_per)
    bytes_accessed = int(4 * (sum(int(x.size) for x in inputs) + B * c_out * Np))

    out = pl.pallas_call(
        kernel,
        out_shape=jax.ShapeDtypeStruct((B, c_out, Np), jnp.float32),
        grid_spec=pltpu.PrefetchScalarGridSpec(
            num_scalar_prefetch=0,
            grid=(B, NT),
            in_specs=in_specs,
            out_specs=pl.BlockSpec((1, c_out, tn), lambda b, n: (b, 0, n)),
        ),
        compiler_params=pltpu.CompilerParams(
            dimension_semantics=("parallel", "parallel")),
        cost_estimate=pl.CostEstimate(
            flops=flops, transcendentals=0, bytes_accessed=bytes_accessed),
    )(*inputs)
    return out


def _choose_tn(N, K, B):
    """Lane tile over points: keep K*tn ~ 2048 lanes (vreg pressure), >=2 grid steps."""
    tn = max(128, min(512, (2048 // max(K, 1)) // 128 * 128))
    np128 = _round_up(N, 128)
    tn = min(tn, np128)
    while B * ((np128 + tn - 1) // tn) < 2 and tn > 128:
        tn //= 2
    return tn


# ---------------------------------------------------------------------------
# Full PointConvFlow forward (kernel path) and pure-JAX reference.
# ---------------------------------------------------------------------------

def pointconv_flow_forward(xyz1, xyz2, points1, points2,
                           mlp_params, wn1_params, wn2_params, nsample):
    """xyz*: (B,3,N*), points*: (B,D*,N*) -> (B, C_last, N1)."""
    B, _, N1 = xyz1.shape
    D1 = points1.shape[1]
    D2 = points2.shape[1]
    K = nsample
    assert len(mlp_params) >= 1, "fused stage-1 kernel expects at least one MLP layer"
    assert mlp_params[0][0].shape[1] == D1 + D2 + 3, "first MLP layer must take cat([p1,p2,dir])"
    c_last = mlp_params[-1][0].shape[0]

    xyz1_t = jnp.transpose(xyz1, (0, 2, 1))     # (B, N1, 3)  (tiny xyz-only transposes)
    xyz2_t = jnp.transpose(xyz2, (0, 2, 1))     # (B, N2, 3)

    knn1 = knn_point(K, xyz2_t, xyz1_t)         # (B, N1, K) indices into xyz2
    knn2 = knn_point(K, xyz1_t, xyz1_t)         # (B, N1, K) indices into xyz1

    tn = _choose_tn(N1, K, B)
    Np = _round_up(N1, tn)
    NT = Np // tn

    def flat_group_idx(idx):
        # (B, N1, K) -> (B, NT*K*tn) with flat = nt*K*tn + k*tn + j, point n = nt*tn + j.
        idx = jnp.pad(idx, ((0, 0), (0, Np - N1), (0, 0)))
        idx = idx.reshape(B, NT, tn, K)
        idx = jnp.transpose(idx, (0, 1, 3, 2))
        return idx.reshape(B, NT * K * tn)

    idx1 = flat_group_idx(knn1)
    idx2 = flat_group_idx(knn2)

    # Channel-major gathers with K already folded into the lane axis (index reshaped,
    # not the data) -> no XLA transposes over K-inflated tensors.
    gather_cm = jax.vmap(lambda src, i: src[:, i])          # (C, M), (L,) -> (C, L)

    pad_n = lambda x: jnp.pad(x, ((0, 0), (0, 0), (0, Np - N1)))
    xyz1_p = pad_n(xyz1.astype(jnp.float32))                # (B, 3, Np)
    p1_p = pad_n(points1.astype(jnp.float32))               # (B, D1, Np)

    # ---- stage 1: point-to-patch cost ----
    xyz2_g = gather_cm(xyz2.astype(jnp.float32), idx1)      # (B, 3,  NT*K*tn)
    p2_g = gather_cm(points2.astype(jnp.float32), idx1)     # (B, D2, NT*K*tn)

    packed1, metas1 = _pack_params(list(mlp_params) + list(wn1_params))
    metas1_mlp = metas1[:len(mlp_params)]
    metas1_wn = metas1[len(mlp_params):]

    point_to_patch = _fused_patch_cost(
        p2_g, xyz2_g, xyz1_p, packed1, metas1_mlp, metas1_wn,
        c_last, K, tn, p1=p1_p, d1=D1, d2=D2)               # (B, c_last, Np)

    # ---- stage 2: patch-to-patch cost ----
    xyz1_g = gather_cm(xyz1.astype(jnp.float32), idx2)      # (B, 3, NT*K*tn)
    cost_g = gather_cm(point_to_patch, idx2)                # (B, c_last, NT*K*tn)

    packed2, metas2 = _pack_params(list(wn2_params))
    patch_to_patch = _fused_patch_cost(
        cost_g, xyz1_g, xyz1_p, packed2, [], metas2, c_last, K, tn)

    return patch_to_patch[:, :, :N1]


def pointconv_flow_reference(xyz1, xyz2, points1, points2,
                             mlp_params, wn1_params, wn2_params, nsample):
    """Pure-JAX replica of the PyTorch PointConvFlow.forward (bn=False, leaky)."""
    B, _, N1 = xyz1.shape
    D1 = points1.shape[1]

    xyz1_t = jnp.transpose(xyz1, (0, 2, 1))
    xyz2_t = jnp.transpose(xyz2, (0, 2, 1))
    p1 = jnp.transpose(points1, (0, 2, 1))
    p2 = jnp.transpose(points2, (0, 2, 1))

    knn_idx = knn_point(nsample, xyz2_t, xyz1_t)
    neighbor_xyz = index_points_group(xyz2_t, knn_idx)
    direction_xyz = neighbor_xyz - xyz1_t[:, :, None, :]
    grouped_p2 = index_points_group(p2, knn_idx)
    grouped_p1 = jnp.broadcast_to(p1[:, :, None, :], (B, N1, nsample, D1))
    h = jnp.concatenate([grouped_p1, grouped_p2, direction_xyz], axis=-1)
    for w, b in mlp_params:
        h = jnp.einsum("bnkc,oc->bnko", h, w) + b
        h = jnp.where(h > 0, h, LEAKY_RATE * h)
    g = direction_xyz
    for w, b in wn1_params:
        g = jnp.einsum("bnkc,oc->bnko", g, w) + b
        g = jnp.maximum(g, 0.0)
    point_to_patch = jnp.sum(h * g, axis=2)                 # (B, N1, C_last)

    knn_idx2 = knn_point(nsample, xyz1_t, xyz1_t)
    neighbor_xyz2 = index_points_group(xyz1_t, knn_idx2)
    direction_xyz2 = neighbor_xyz2 - xyz1_t[:, :, None, :]
    g2 = direction_xyz2
    for w, b in wn2_params:
        g2 = jnp.einsum("bnkc,oc->bnko", g2, w) + b
        g2 = jnp.maximum(g2, 0.0)
    grouped_cost = index_points_group(point_to_patch, knn_idx2)   # (B, N1, K, C_last)
    patch_to_patch = jnp.sum(g2 * grouped_cost, axis=2)           # (B, N1, C_last)
    return jnp.transpose(patch_to_patch, (0, 2, 1))               # (B, C_last, N1)


# ---------------------------------------------------------------------------
# Parameter construction (deterministic, Conv2d k=1 -> (C_out, C_in) + bias).
# ---------------------------------------------------------------------------

def _init_conv(key, c_in, c_out):
    kw, kb = jax.random.split(key)
    scale = 1.0 / jnp.sqrt(jnp.float32(c_in))
    w = jax.random.normal(kw, (c_out, c_in), dtype=jnp.float32) * scale
    b = jax.random.normal(kb, (c_out,), dtype=jnp.float32) * scale
    return w, b


def _init_weightnet(key, c_in, c_out, hidden=(8, 8)):
    layers = []
    c = c_in
    keys = jax.random.split(key, len(hidden) + 1)
    for i, h in enumerate(hidden):
        layers.append(_init_conv(keys[i], c, h))
        c = h
    layers.append(_init_conv(keys[-1], c, c_out))
    return layers


if __name__ == "__main__":
    # Small shapes consistent with the module.
    B, N1, N2 = 2, 128, 128
    D1 = D2 = 8
    nsample = 8
    mlp = [16, 16]
    in_channel = D1 + D2 + 3          # channel count of cat([p1, p2, dir]) = 19
    last_channel = mlp[-1]

    key = jax.random.PRNGKey(0)
    keys = jax.random.split(key, 10)

    xyz1 = jax.random.normal(keys[0], (B, 3, N1), dtype=jnp.float32)
    xyz2 = jax.random.normal(keys[1], (B, 3, N2), dtype=jnp.float32)
    points1 = jax.random.normal(keys[2], (B, D1, N1), dtype=jnp.float32)
    points2 = jax.random.normal(keys[3], (B, D2, N2), dtype=jnp.float32)

    # mlp_convs: Conv2d(k=1) stack in_channel -> mlp[...]
    mlp_params = []
    c = in_channel
    for i, oc in enumerate(mlp):
        mlp_params.append(_init_conv(keys[4 + i], c, oc))
        c = oc
    # WeightNet1 / WeightNet2: 3 -> 8 -> 8 -> last_channel
    wn1_params = _init_weightnet(keys[7], 3, last_channel)
    wn2_params = _init_weightnet(keys[8], 3, last_channel)

    out = pointconv_flow_forward(xyz1, xyz2, points1, points2,
                                 mlp_params, wn1_params, wn2_params, nsample)
    out = jax.block_until_ready(out)

    ref = pointconv_flow_reference(xyz1, xyz2, points1, points2,
                                   mlp_params, wn1_params, wn2_params, nsample)
    ref = jax.block_until_ready(ref)

    assert out.shape == (B, last_channel, N1), out.shape
    max_err = float(jnp.max(jnp.abs(out - ref)))
    assert jnp.allclose(out, ref, atol=2e-3, rtol=2e-3), f"max abs err = {max_err}"

    print("KERNEL_OK")
</pallas_src>

<mosaic_0001>
module attributes {stable_mosaic.version = 11 : i64} {
  func.func @kernel(%arg0: i32, %arg1: i32, %arg2: memref<1x8x128xf32, #tpu.memory_space<vmem>>, %arg3: memref<1x8x1024xf32, #tpu.memory_space<vmem>>, %arg4: memref<1x3x1024xf32, #tpu.memory_space<vmem>>, %arg5: memref<1x3x128xf32, #tpu.memory_space<vmem>>, %arg6: memref<64x128xf32, #tpu.memory_space<vmem>>, %arg7: memref<1x16x128xf32, #tpu.memory_space<vmem>>) attributes {dimension_semantics = [#tpu.dimension_semantics<parallel>, #tpu.dimension_semantics<parallel>], iteration_bounds = array<i64: 2, 1>, scalar_prefetch = 0 : i64, scratch_operands = 0 : i64, tpu.core_type = #tpu.core_type<tc>, window_params = [{transform_indices = @transform_0, window_bounds = array<i64: 1, 8, 128>}, {transform_indices = @transform_1, window_bounds = array<i64: 1, 8, 1024>}, {transform_indices = @transform_2, window_bounds = array<i64: 1, 3, 1024>}, {transform_indices = @transform_3, window_bounds = array<i64: 1, 3, 128>}, {pipeline_mode = #tpu.pipeline_mode<synchronous>, transform_indices = @transform_4, window_bounds = array<i64: 64, 128>}, {transform_indices = @transform_5, window_bounds = array<i64: 1, 16, 128>}]} {
    %c0 = arith.constant 0 : index
    %c0_0 = arith.constant 0 : index
    %0 = vector.load %arg6[%c0, %c0_0] : memref<64x128xf32, #tpu.memory_space<vmem>>, vector<64x128xf32>
    %c0_1 = arith.constant 0 : index
    %c0_2 = arith.constant 0 : index
    %c0_3 = arith.constant 0 : index
    %1 = vector.load %arg5[%c0_1, %c0_2, %c0_3] : memref<1x3x128xf32, #tpu.memory_space<vmem>>, vector<1x3x128xf32>
    %2 = vector.shape_cast %1 : vector<1x3x128xf32> to vector<3x128xf32>
    %c0_4 = arith.constant 0 : index
    %c0_5 = arith.constant 0 : index
    %c0_6 = arith.constant 0 : index
    %3 = vector.load %arg4[%c0_4, %c0_5, %c0_6] : memref<1x3x1024xf32, #tpu.memory_space<vmem>>, vector<1x3x1024xf32>
    %4 = vector.shape_cast %3 : vector<1x3x1024xf32> to vector<3x1024xf32>
    %5 = tpu.concatenate %2, %2, %2, %2, %2, %2, %2, %2 in 1 : vector<3x128xf32>, vector<3x128xf32>, vector<3x128xf32>, vector<3x128xf32>, vector<3x128xf32>, vector<3x128xf32>, vector<3x128xf32>, vector<3x128xf32> -> vector<3x1024xf32>
    %6 = arith.subf %4, %5 : vector<3x1024xf32>
    %7 = vector.extract_strided_slice %0 {offsets = [0, 0], sizes = [16, 19], strides = [1, 1]} : vector<64x128xf32> to vector<16x19xf32>
    %8 = vector.extract_strided_slice %0 {offsets = [0, 19], sizes = [16, 1], strides = [1, 1]} : vector<64x128xf32> to vector<16x1xf32>
    %9 = vector.extract_strided_slice %7 {offsets = [0, 0], sizes = [16, 8], strides = [1, 1]} : vector<16x19xf32> to vector<16x8xf32>
    %10 = vector.extract_strided_slice %7 {offsets = [0, 8], sizes = [16, 8], strides = [1, 1]} : vector<16x19xf32> to vector<16x8xf32>
    %11 = vector.extract_strided_slice %7 {offsets = [0, 16], sizes = [16, 3], strides = [1, 1]} : vector<16x19xf32> to vector<16x3xf32>
    %c0_7 = arith.constant 0 : index
    %c0_8 = arith.constant 0 : index
    %c0_9 = arith.constant 0 : index
    %12 = vector.load %arg2[%c0_7, %c0_8, %c0_9] : memref<1x8x128xf32, #tpu.memory_space<vmem>>, vector<1x8x128xf32>
    %13 = vector.shape_cast %12 : vector<1x8x128xf32> to vector<8x128xf32>
    %cst = arith.constant dense<0.000000e+00> : vector<16x128xf32>
    %14 = tpu.matmul %9, %13, %cst {dimension_numbers = #tpu.dot_dimension_numbers<[1], [0], [0], [1], [0, 0, 1, 1], [], []>} : vector<16x8xf32>, vector<8x128xf32>, vector<16x128xf32> -> vector<16x128xf32>
    %15 = vector.broadcast %8 : vector<16x1xf32> to vector<16x128xf32>
    %16 = arith.addf %14, %15 : vector<16x128xf32>
    %17 = tpu.concatenate %16, %16, %16, %16, %16, %16, %16, %16 in 1 : vector<16x128xf32>, vector<16x128xf32>, vector<16x128xf32>, vector<16x128xf32>, vector<16x128xf32>, vector<16x128xf32>, vector<16x128xf32>, vector<16x128xf32> -> vector<16x1024xf32>
    %c0_10 = arith.constant 0 : index
    %c0_11 = arith.constant 0 : index
    %c0_12 = arith.constant 0 : index
    %18 = vector.load %arg3[%c0_10, %c0_11, %c0_12] : memref<1x8x1024xf32, #tpu.memory_space<vmem>>, vector<1x8x1024xf32>
    %19 = vector.shape_cast %18 : vector<1x8x1024xf32> to vector<8x1024xf32>
    %cst_13 = arith.constant dense<0.000000e+00> : vector<16x1024xf32>
    %20 = tpu.matmul %10, %19, %cst_13 {dimension_numbers = #tpu.dot_dimension_numbers<[1], [0], [0], [1], [0, 0, 1, 1], [], []>} : vector<16x8xf32>, vector<8x1024xf32>, vector<16x1024xf32> -> vector<16x1024xf32>
    %21 = arith.addf %17, %20 : vector<16x1024xf32>
    %cst_14 = arith.constant dense<0.000000e+00> : vector<16x1024xf32>
    %22 = tpu.matmul %11, %6, %cst_14 {dimension_numbers = #tpu.dot_dimension_numbers<[1], [0], [0], [1], [0, 0, 1, 1], [], []>} : vector<16x3xf32>, vector<3x1024xf32>, vector<16x1024xf32> -> vector<16x1024xf32>
    %23 = arith.addf %21, %22 : vector<16x1024xf32>
    %cst_15 = arith.constant 1.000000e-01 : f32
    %24 = vector.broadcast %cst_15 : f32 to vector<16x1024xf32>
    %25 = arith.mulf %24, %23 : vector<16x1024xf32>
    %26 = arith.maximumf %23, %25 : vector<16x1024xf32>
    %27 = vector.extract_strided_slice %0 {offsets = [16, 0], sizes = [16, 16], strides = [1, 1]} : vector<64x128xf32> to vector<16x16xf32>
    %28 = vector.extract_strided_slice %0 {offsets = [16, 16], sizes = [16, 1], strides = [1, 1]} : vector<64x128xf32> to vector<16x1xf32>
    %cst_16 = arith.constant dense<0.000000e+00> : vector<16x1024xf32>
    %29 = tpu.matmul %27, %26, %cst_16 {dimension_numbers = #tpu.dot_dimension_numbers<[1], [0], [0], [1], [0, 0, 1, 1], [], []>} : vector<16x16xf32>, vector<16x1024xf32>, vector<16x1024xf32> -> vector<16x1024xf32>
    %30 = vector.broadcast %28 : vector<16x1xf32> to vector<16x1024xf32>
    %31 = arith.addf %29, %30 : vector<16x1024xf32>
    %cst_17 = arith.constant 1.000000e-01 : f32
    %32 = vector.broadcast %cst_17 : f32 to vector<16x1024xf32>
    %33 = arith.mulf %32, %31 : vector<16x1024xf32>
    %34 = arith.maximumf %31, %33 : vector<16x1024xf32>
    %35 = vector.extract_strided_slice %0 {offsets = [32, 0], sizes = [8, 3], strides = [1, 1]} : vector<64x128xf32> to vector<8x3xf32>
    %36 = vector.extract_strided_slice %0 {offsets = [32, 3], sizes = [8, 1], strides = [1, 1]} : vector<64x128xf32> to vector<8x1xf32>
    %cst_18 = arith.constant dense<0.000000e+00> : vector<8x1024xf32>
    %37 = tpu.matmul %35, %6, %cst_18 {dimension_numbers = #tpu.dot_dimension_numbers<[1], [0], [0], [1], [0, 0, 1, 1], [], []>} : vector<8x3xf32>, vector<3x1024xf32>, vector<8x1024xf32> -> vector<8x1024xf32>
    %38 = vector.broadcast %36 : vector<8x1xf32> to vector<8x1024xf32>
    %39 = arith.addf %37, %38 : vector<8x1024xf32>
    %cst_19 = arith.constant 0.000000e+00 : f32
    %40 = vector.broadcast %cst_19 : f32 to vector<8x1024xf32>
    %41 = arith.maximumf %39, %40 : vector<8x1024xf32>
    %42 = vector.extract_strided_slice %0 {offsets = [40, 0], sizes = [8, 8], strides = [1, 1]} : vector<64x128xf32> to vector<8x8xf32>
    %43 = vector.extract_strided_slice %0 {offsets = [40, 8], sizes = [8, 1], strides = [1, 1]} : vector<64x128xf32> to vector<8x1xf32>
    %cst_20 = arith.constant dense<0.000000e+00> : vector<8x1024xf32>
    %44 = tpu.matmul %42, %41, %cst_20 {dimension_numbers = #tpu.dot_dimension_numbers<[1], [0], [0], [1], [0, 0, 1, 1], [], []>} : vector<8x8xf32>, vector<8x1024xf32>, vector<8x1024xf32> -> vector<8x1024xf32>
    %45 = vector.broadcast %43 : vector<8x1xf32> to vector<8x1024xf32>
    %46 = arith.addf %44, %45 : vector<8x1024xf32>
    %cst_21 = arith.constant 0.000000e+00 : f32
    %47 = vector.broadcast %cst_21 : f32 to vector<8x1024xf32>
    %48 = arith.maximumf %46, %47 : vector<8x1024xf32>
    %49 = vector.extract_strided_slice %0 {offsets = [48, 0], sizes = [16, 8], strides = [1, 1]} : vector<64x128xf32> to vector<16x8xf32>
    %50 = vector.extract_strided_slice %0 {offsets = [48, 8], sizes = [16, 1], strides = [1, 1]} : vector<64x128xf32> to vector<16x1xf32>
    %cst_22 = arith.constant dense<0.000000e+00> : vector<16x1024xf32>
    %51 = tpu.matmul %49, %48, %cst_22 {dimension_numbers = #tpu.dot_dimension_numbers<[1], [0], [0], [1], [0, 0, 1, 1], [], []>} : vector<16x8xf32>, vector<8x1024xf32>, vector<16x1024xf32> -> vector<16x1024xf32>
    %52 = vector.broadcast %50 : vector<16x1xf32> to vector<16x1024xf32>
    %53 = arith.addf %51, %52 : vector<16x1024xf32>
    %cst_23 = arith.constant 0.000000e+00 : f32
    %54 = vector.broadcast %cst_23 : f32 to vector<16x1024xf32>
    %55 = arith.maximumf %53, %54 : vector<16x1024xf32>
    %56 = arith.mulf %34, %55 : vector<16x1024xf32>
    %57 = vector.extract_strided_slice %56 {offsets = [0, 0], sizes = [16, 128], strides = [1, 1]} : vector<16x1024xf32> to vector<16x128xf32>
    %58 = vector.extract_strided_slice %56 {offsets = [0, 128], sizes = [16, 128], strides = [1, 1]} : vector<16x1024xf32> to vector<16x128xf32>
    %59 = arith.addf %57, %58 : vector<16x128xf32>
    %60 = vector.extract_strided_slice %56 {offsets = [0, 256], sizes = [16, 128], strides = [1, 1]} : vector<16x1024xf32> to vector<16x128xf32>
    %61 = arith.addf %59, %60 : vector<16x128xf32>
    %62 = vector.extract_strided_slice %56 {offsets = [0, 384], sizes = [16, 128], strides = [1, 1]} : vector<16x1024xf32> to vector<16x128xf32>
    %63 = arith.addf %61, %62 : vector<16x128xf32>
    %64 = vector.extract_strided_slice %56 {offsets = [0, 512], sizes = [16, 128], strides = [1, 1]} : vector<16x1024xf32> to vector<16x128xf32>
    %65 = arith.addf %63, %64 : vector<16x128xf32>
    %66 = vector.extract_strided_slice %56 {offsets = [0, 640], sizes = [16, 128], strides = [1, 1]} : vector<16x1024xf32> to vector<16x128xf32>
    %67 = arith.addf %65, %66 : vector<16x128xf32>
    %68 = vector.extract_strided_slice %56 {offsets = [0, 768], sizes = [16, 128], strides = [1, 1]} : vector<16x1024xf32> to vector<16x128xf32>
    %69 = arith.addf %67, %68 : vector<16x128xf32>
    %70 = vector.extract_strided_slice %56 {offsets = [0, 896], sizes = [16, 128], strides = [1, 1]} : vector<16x1024xf32> to vector<16x128xf32>
    %71 = arith.addf %69, %70 : vector<16x128xf32>
    %c0_24 = arith.constant 0 : index
    %c0_25 = arith.constant 0 : index
    %c0_26 = arith.constant 0 : index
    %72 = vector.load %arg7[%c0_24, %c0_25, %c0_26] : memref<1x16x128xf32, #tpu.memory_space<vmem>>, vector<1x16x128xf32>
    %73 = vector.shape_cast %72 : vector<1x16x128xf32> to vector<16x128xf32>
    %74 = vector.shape_cast %71 : vector<16x128xf32> to vector<1x16x128xf32>
    tpu.vector_store %arg7[%c0_24, %c0_25, %c0_26], %74 {strides = array<i32>} : memref<1x16x128xf32, #tpu.memory_space<vmem>>, vector<1x16x128xf32>,
    return
  }
  func.func @transform_0(%arg0: i32, %arg1: i32) -> (i32, i32, i32) {
    %c0_i32 = arith.constant 0 : i32
    %c0_i32_0 = arith.constant 0 : i32
    return %arg0, %c0_i32, %arg1 : i32, i32, i32
  }
  func.func @transform_1(%arg0: i32, %arg1: i32) -> (i32, i32, i32) {
    %c0_i32 = arith.constant 0 : i32
    %c0_i32_0 = arith.constant 0 : i32
    return %arg0, %c0_i32, %arg1 : i32, i32, i32
  }
  func.func @transform_2(%arg0: i32, %arg1: i32) -> (i32, i32, i32) {
    %c0_i32 = arith.constant 0 : i32
    %c0_i32_0 = arith.constant 0 : i32
    return %arg0, %c0_i32, %arg1 : i32, i32, i32
  }
  func.func @transform_3(%arg0: i32, %arg1: i32) -> (i32, i32, i32) {
    %c0_i32 = arith.constant 0 : i32
    %c0_i32_0 = arith.constant 0 : i32
    return %arg0, %c0_i32, %arg1 : i32, i32, i32
  }
  func.func @transform_4(%arg0: i32, %arg1: i32) -> (i32, i32) {
    %c0_i32 = arith.constant 0 : i32
    %c0_i32_0 = arith.constant 0 : i32
    %c0_i32_1 = arith.constant 0 : i32
    return %c0_i32, %c0_i32_0 : i32, i32
  }
  func.func @transform_5(%arg0: i32, %arg1: i32) -> (i32, i32, i32) {
    %c0_i32 = arith.constant 0 : i32
    %c0_i32_0 = arith.constant 0 : i32
    return %arg0, %c0_i32, %arg1 : i32, i32, i32
  }
}

</mosaic_0001>

<bundles_post_ra>
// kernel: tpu_custom_call.1
= control target key start
LH: loop header
LB: loop body
LE: loop exit
PB: predicated region body
PF: predicated region fallthrough
CT: control target
= control target key end

     0   :  { %10 = vsyncpa [#allocation3], 0  ;;  %s3653_s0 = inlined_call_operand.hbm [shape: f32[2,8,128], index: 0, kind: input, shape index: {}]   ;;  %s3654_s1 = inlined_call_operand.vmem [shape: f32[2,8,1024], index: 1, kind: input, shape index: {}]   ;;  %s3655_s2 = inlined_call_operand.vmem [shape: f32[2,3,1024], index: 2, kind: input, shape index: {}]   ;;  %s3656_s3 = inlined_call_operand.vmem [shape: f32[2,3,128], index: 3, kind: input, shape index: {}]   ;;  %s3657_s4 = inlined_call_operand.hbm [shape: f32[64,128], index: 4, kind: input, shape index: {}]   ;;  %s3658_s5 = inlined_call_operand.hbm [shape: f32[2,16,128], index: 5, kind: output, shape index: {}]  }
   0x1   :  { %12 = vsyncpa [#allocation3 + $0x1], 0 }
   0x2   :  { %13 = vsyncpa [#allocation6], 0 }
   0x3   :  { %14 = vsyncpa [#allocation4], 0 }
   0x4   :  { %16 = vsyncpa [#allocation4 + $0x1], 0  ;;  %s3115_s18 = smov 0   ;;  %s3117_s19 = smov 0  }
   0x5   :  { %s3119_s20 = smov 0   ;;  %s3121_s21 = smov 0  }
   0x6   :  { %s3123_s22 = smov 0   ;;  %s3125_s23 = smov 0  }
   0x7 LB: > { %s2696_s24 = sadd.s32 4294967295, %s3069_s23   ;;  %s2697_s25 = sadd.s32 4294967294, %s3069_s23   ;;  %s3069_s23 = sphi %s3125_s23, %s22_s23   ;;  %s3065_s22 = sphi %s3123_s22, %s3682_s22   ;;  %s3061_s21 = sphi %s3121_s21, %s3681_s21   ;;  %s3057_s20 = sphi %s3119_s20, %s3680_s20   ;;  %s3053_s19 = sphi %s3117_s19, %s3679_s19   ;;  %s3049_s18 = sphi %s3115_s18, %s3678_s18  }
   0x8   : > { %p56_p0 = scmp.ne.s32.totalorder %s3053_s19, %s3049_s18  ;;  %p3149_p1 = scmp.eq.s32.totalorder %s2696_s24, 0 }
   0x9   : > { %p3153_p2 = scmp.eq.s32.totalorder %s2696_s24, 1  ;;  %p193_p3 = scmp.eq.s32.totalorder %s2697_s25, 1 }
   0xa   : > { %s3663_s26 = scalar_select %p3149_p1, 1, 0 }
   0xb   : > { %s3664_s27 = scalar_select %p3153_p2, 1, 0 }
   0xc   : > { %p3159_p4 = por %p3149_p1, %p56_p0  ;;  %p2698_p5 = scmp.ge.s32.totalorder %s3069_s23, 1 }
   0xd   : > { %p3164_p6 = por %p193_p3, %p56_p0  ;;  %p200_p7 = scmp.lt.s32.totalorder %s3069_s23, 3 }
   0xe   : > { %s3665_s28 = scalar_select %p3159_p4, 1, 0 }
   0xf   : > { %s3666_s29 = scalar_select %p3164_p6, 1, 0 }
  0x10   : > { %p3169_p8 = pnand %p2698_p5, %p200_p7  ;;  %s3071_s6 = smov [#allocation5]  }
  0x11   : > { %s212_s7 = sshll.u32 %s3071_s6, 4  ;;  %s34_s9 = sadd.s32 1, %s3065_s22  ;;  %s213_s7 = int_to_ptr.vmem [resolvable:$true] %s212_s7 }
  0x12   : > { %s3667_s30 = scalar_select %p3169_p8, 1, 0 }
  0x13   : > { %p2842_p9 = pneg %p3169_p8  ;;  %s2925_s12 = scalar_lea.hbm %s3657_s4, 1024 }
  0x14   : > { %p2926_p12 = scmp.ne.s32.totalorder %s3657_s4, %s2925_s12  ;;  %p2932_p5 = scmp.lt.u32.totalorder %s2925_s12, %s3657_s4 }
  0x15   : > { %p3178_p11 = pnand %p2842_p9, %p3149_p1 }
  0x17   : > { %p2927_p13 = pneg %p3178_p11 }
  0x19   : > { %p2928_p0 = pnand %p2927_p13, %p2926_p12 }
  0x1b   : > { %p2929_p3 = pneg %p2928_p0 }
  0x1d   : > { %p2934_p7 = pnand %p2932_p5, %p2929_p3 }
  0x1f   : > { %2937 = shalt.err (!%p2934_p7)
}
  0x20   : > { %s2938_s17 = scalar_lea.vmem %s213_s7, 1024  ;;  %p2946_p1 = scmp.lt.s32.totalorder %s213_s7, %s213_s7 }
  0x21   : > { %p2939_p9 = scmp.ne.s32.totalorder %s213_s7, %s2938_s17  ;;  %p2947_p4 = scmp.lt.s32.totalorder %s2938_s17, %s2938_s17 }
  0x23   : > { %p2941_p10 = pnand %p2939_p9, %p2927_p13  ;;  %p2948_p8 = por %p2947_p4, %p2946_p1 }
  0x25   : > { %p2942_p6 = pneg %p2941_p10 }
  0x27   : > { %p2949_p2 = pnand %p2948_p8, %p2942_p6 }
  0x29   : > { %2952 = shalt.err (!%p2949_p2)
}
  0x2a   : > { %s3072_s24 = smov 128   ;;  %s3073_s25 = smov 8  }
  0x2b   : > { %2845 = dma.hbm_to_vmem [thread:$0]  (!%p3178_p11), %s3657_s4, 1024, %s213_s7, [#allocation6], %s3072_s24, %s3072_s24, %s3073_s25  }
  0x2c   : > { %p36_p1 = scmp.ge.s32.totalorder %s34_s9, 2  ;;  %s43_s11 = sadd.s32 1, %s3057_s20 }
  0x2d   : > { %p50_p2 = scmp.ne.s32.totalorder %s3057_s20, %s3053_s19  ;;  %p51_p4 = scmp.eq.s32.totalorder %s3069_s23, 0 }
  0x2e   : > { %s3684_s9 = smov (%p36_p1, %s34_s9), 0  ;;  %p3670_p8 = scmp.ne.s32.totalorder %s3664_s27, 0 }
  0x2f   : > { %p3205_p6 = por %p51_p4, %p50_p2  ;;  %s38_s8 = ssub.s32 %s3065_s22, %s3684_s9 }
  0x30   : > { %p3211_p10 = por %p3670_p8, %p50_p2  ;;  %p2855_p12 = scmp.lt.s32.totalorder %s3069_s23, 2 }
  0x31   : > { %p41_p11 = scmp.eq.s32.totalorder %s38_s8, 0  ;;  %s226_s7 = sand.u32 1, %s3057_s20  }
  0x32   : > { %s2701_s14 = sshll.u32 %s226_s7, 3  ;;  %s2702_s16 = sshll.u32 %s3065_s22, 7 }
  0x33   : > { %s3220_s15 = scalar_select %p41_p11, %s3057_s20, %s43_s11  }
  0x34   : > { %s3226_s25 = scalar_lea.hbm %s3653_s0, %s2702_s16  ;;  %s230_s27 = scalar_lea.vmem [#allocation2], %s2701_s14 }
  0x35   : > { %s238_s6 = sshll.u32 %s230_s27, 4  ;;  %p3232_p13 = pnand %p2855_p12, %p3205_p6  ;;  %s3228_s6 = int_to_ptr.vmem [resolvable:$true] %s238_s6 }
  0x36   : > { %s227_s11 = scalar_lea.sflag [#allocation3], %s226_s7  ;;  %s2953_s8 = scalar_lea.hbm %s3226_s25, 128 }
  0x37   : > { %p2954_p0 = scmp.ne.s32.totalorder %s3226_s25, %s2953_s8  ;;  %p2955_p3 = pneg %p3232_p13 }
  0x38   : > { %s2958_s17 = scalar_lea.hbm %s3653_s0, 256  ;;  %p2959_p9 = scmp.lt.u32.totalorder %s3226_s25, %s3653_s0 }
  0x39   : > { %p2956_p5 = pnand %p2955_p3, %p2954_p0  ;;  %p2960_p1 = scmp.lt.u32.totalorder %s2958_s17, %s2953_s8 }
  0x3a   : > { %p2962_p4 = scmp.lt.u32.totalorder %s2953_s8, %s3226_s25 }
  0x3b   : > { %p2957_p7 = pneg %p2956_p5  ;;  %p2961_p2 = por %p2960_p1, %p2959_p9 }
  0x3d   : > { %p2963_p6 = por %p2962_p4, %p2961_p2 }
  0x3f   : > { %p2964_p8 = pnand %p2963_p6, %p2957_p7 }
  0x41   : > { %2967 = shalt.err (!%p2964_p8)
}
  0x42   : > { %s2968_s7 = scalar_lea.vmem %s3228_s6, 128  ;;  %s3074_s27 = smov [#allocation2]  }
  0x43   : > { %p2969_p12 = scmp.ne.s32.totalorder %s3228_s6, %s2968_s7  ;;  %s2973_s14 = sshll.u32 %s3074_s27, 4  ;;  %s2974_s14 = int_to_ptr.vmem [resolvable:$false] %s2973_s14 }
  0x44   : > { %s2975_s16 = scalar_lea.vmem %s2974_s14, 256  ;;  %p2976_p5 = scmp.lt.s32.totalorder %s3228_s6, %s2974_s14 }
  0x45   : > { %p2971_p11 = pnand %p2969_p12, %p2955_p3  ;;  %p2977_p9 = scmp.lt.s32.totalorder %s2975_s16, %s2968_s7 }
  0x47   : > { %p2972_p0 = pneg %p2971_p11  ;;  %p2978_p1 = por %p2977_p9, %p2976_p5 }
  0x49   : > { %p2979_p2 = pnand %p2978_p1, %p2972_p0 }
  0x4b   : > { %2982 = shalt.err (!%p2979_p2)
}
  0x4c   : > { %2849 = dma.hbm_to_vmem [thread:$0]  (!%p3232_p13), %s3226_s25, 128, %s3228_s6, %s227_s11  }
  0x4d   : > { %p3673_p7 = scmp.ne.s32.totalorder %s3667_s30, 0 }
  0x4e   : > { %s3264_s8 = sand.u32 (!%p3673_p7), 1, %s3053_s19   ;;  %p3674_p3 = scmp.ne.s32.totalorder (!%p3673_p7), %s3665_s28, 0 }
  0x4f   : > { %283 = sbr.rel (%p3673_p7) target bundleno = 1160 (0x488), region = 40  ;;  %s2704_s17 = sshll.u32 (!%p3673_p7), %s3264_s8, 3 }
  0x50   : > { %s286_s12 = scalar_lea.sflag (!%p3673_p7), [#allocation3], %s3264_s8  ;;  %s289_s24 = scalar_lea.vmem (!%p3673_p7), [#allocation2], %s2704_s17 }
  0x56   : > { %3036 = dma.done.wait (%p3674_p3), %s286_s12, 128  }
  0x57   : > { %3038 = vsyncadd (%p3674_p3), %s286_s12, 4294967168  ;;  %p3675_p4 = scmp.ne.s32.totalorder %s3663_s26, 0 }
  0x59   : > { %3040 = dma.done.wait (%p3675_p4), [#allocation6], 1024  }
  0x5a   : > { %3042 = vsyncadd (%p3675_p4), [#allocation6], 4294966272  ;;  %p346_p13 = scmp.lt.s32.totalorder %s3061_s21, 1  ;;  %v3075_v0 = vmov 0.0   ;;  %vm403_vm0 = vcmask 64512   ;;  %v372_v1 = vld [vmem:[#allocation5] sm:$0xff] }
  0x5b   : > { %563 = vmatprep.mubr.f32.mxu1 %v3075_v0  ;;  %v392_v2 = vld [vmem:[%s289_s24] sm:$0xff]  ;;  %s3076_s7 = smov 120   ;;  %s3077_s27 = smov 112   ;;  %v373_v5 = vld [vmem:[#allocation5 + $0x8] sm:$0xff]  ;;  %2783 = vmatprep.mubr.msk.f32.mxu0 %vm403_vm0, %v372_v1  ;;  %v3078_v19 = vmov 19   ;;  %vm840_vm1 = vcmask 1042432  }
  0x5c   : > { %s347_s30 = scalar_select %p346_p13, %s3061_s21, 1  ;;  %491 = vrot.lane.b32.xlu0 %v372_v1, %s3076_s7  ;;  %823 = vrot.lane.b32.xlu1 %v372_v1, %s3077_s27  ;;  %vm835_vm2 = vcmask 23552   ;;  %v3373_v32 = vld [vmem:[#allocation5 + $0x20] sm:$0xff]  ;;  %v3079_v33 = vmov 3   ;;  %v3376_v34 = vld [vmem:[#allocation5 + $0x10] sm:$0xff]  ;;  %v3080_v35 = vmov 16  }
  0x5d   : > { %2781 = vmatprep.subr.mxu0 %v392_v2  ;;  %2919 = vset.pattern.permute.xlu1 %v3078_v19  ;;  %v3379_v36 = vld [vmem:[#allocation5 + $0x18] sm:$0xff]  ;;  %vm1223_vm3 = vcmask 130048   ;;  %s2777_s11 = sshll.u32 %s3061_s21, 8  ;;  %s3082_s21 = smov [#allocation7]  }
  0x5e   : > { %s2775_s25 = sshll.u32 %s347_s30, 6  ;;  %s2776_s6 = sshll.u32 %s347_s30, 5  ;;  %2782 = vmatpush3.msra.mxu0 %v392_v2  ;;  %2918 = vset.pattern.permute.xlu0 %v3078_v19 }
  0x5f   : > { %s3282_s28 = scalar_lea.vmem %s3654_s1, %s2775_s25  ;;  %s2711_s26 = sshll.u32 %s347_s30, 2  ;;  %2784 = vmatmul.mubr.msk.f32.vlgmr.msra.gmra.mrb[0].mxu0 %vm403_vm0, %v373_v5 }
  0x60   : > { %v484_v3 = vld [vmem:[%s3282_s28 + $0x8] sm:$0xff]  ;;  %v486_v4 = vld [vmem:[%s3282_s28 + $0x18] sm:$0xff]  ;;  %s363_s17 = scalar_lea.vmem %s3655_s2, %s2776_s6  ;;  %v483_v6 = vld [vmem:[%s3282_s28] sm:$0xff]  ;;  %s371_s30 = scalar_lea.vmem %s3656_s3, %s2711_s26  ;;  %493 = vrot.lane.b32.xlu0 %v373_v5, %s3076_s7  ;;  %640 = vmatprep.mubr.f32.mxu0 %v3075_v0 }
  0x61   : > { %499 = vmatprep.subr.mxu1 %v484_v3  ;;  %v485_v7 = vld [vmem:[%s3282_s28 + $0x10] sm:$0xff]  ;;  %v488_v8 = vld [vmem:[%s3282_s28 + $0x28] sm:$0xff]  ;;  %v490_v9 = vld [vmem:[%s3282_s28 + $0x38] sm:$0xff]  ;;  %576 = vmatprep.subr.mxu0 %v486_v4  ;;  %s2706_s25 = sshll.u32 %s3264_s8, 4  ;;  %s3604_s7 = scalar_lea.hbm %s3658_s5, %s2777_s11 }
  0x62   : > { %v381_v10 = vld [vmem:[%s363_s17] sm:$0x77]  ;;  %v382_v11 = vld [vmem:[%s363_s17 + $0x8] sm:$0x77]  ;;  %825 = vrot.lane.b32.xlu1 %v373_v5, %s3077_s27  ;;  %v383_v13 = vld [vmem:[%s363_s17 + $0x10] sm:$0x77]  ;;  %500 = vmatpush1.msra.mxu1 %v483_v6 }
  0x63   : > { %v2924_v12 = vld [vmem:[%s371_s30] ss:$0 sps:$4 sm:$0x77]   ;;  %577 = vmatpush1.msra.mxu0 %v485_v7  ;;  %v384_v14 = vld [vmem:[%s363_s17 + $0x18] sm:$0x77]  ;;  %653 = vmatprep.subr.mxu1 %v488_v8  ;;  %v489_v22 = vld [vmem:[%s3282_s28 + $0x30] sm:$0xff] }
  0x64   : > { %v3299_v15 = vsub.f32 %v381_v10, %v2924_v12  ;;  %v3301_v16 = vsub.f32 %v382_v11, %v2924_v12  ;;  %v3303_v17 = vsub.f32 %v383_v13, %v2924_v12  ;;  %730 = vmatprep.subr.mxu0 %v490_v9  ;;  %v3305_v18 = vsub.f32 %v384_v14, %v2924_v12  ;;  %v487_v21 = vld [vmem:[%s3282_s28 + $0x20] sm:$0xff]  ;;  %s344_s6 = scalar_lea.vmem [#allocation7], %s2706_s25  ;;  %s2537_s27 = scalar_lea.sflag [#allocation4], %s3264_s8 }
  0x65   : > { %395 = vperm.xlu0 %2918, %v372_v1   ;;  %s2551_s10 = sshll.u32 %s344_s6, 4  ;;  %s2987_s16 = sshll.u32 %s3082_s21, 4  ;;  %s3599_s10 = int_to_ptr.vmem [resolvable:$true] %s2551_s10  ;;  %s2988_s16 = int_to_ptr.vmem [resolvable:$false] %s2987_s16 }
  0x66   : > { %400 = vperm.xlu1 %2919, %v373_v5   ;;  %v3311_v23 = vcombine.high %v3299_v15, %v3299_v15  ;;  %v3315_v24 = vcombine.high %v3301_v16, %v3301_v16  ;;  %v3331_v26 = vcombine.high %v3303_v17, %v3303_v17  ;;  %v3335_v27 = vcombine.high %v3305_v18, %v3305_v18  ;;  %s2983_s14 = scalar_lea.vmem %s3599_s10, 256  ;;  %s2989_s17 = scalar_lea.vmem %s2988_s16, 512 }
  0x67   : > { %p2984_p6 = scmp.ne.s32.totalorder %s3599_s10, %s2983_s14  ;;  %p2990_p11 = scmp.lt.s32.totalorder %s3599_s10, %s2988_s16 }
  0x68   : > { %p2991_p0 = scmp.lt.s32.totalorder %s2989_s17, %s2983_s14 }
  0x69   : > { %p2985_p8 = pnand %p2984_p6, %p3211_p10 }
  0x6a   : > { %2920 = vset.pattern.permute.xlu1 %v3079_v33  ;;  %p2992_p5 = por %p2991_p0, %p2990_p11 }
  0x6b   : > { %1570 = vperm.xlu1 %2920, %v3373_v32   ;;  %p2986_p12 = pneg %p2985_p8 }
  0x6d   : > { %p2993_p9 = pnand %p2992_p5, %p2986_p12 }
  0x6f   : > { %2922 = vset.pattern.permute.xlu1 %v3080_v35 }
  0x70   : > { %1215 = vperm.xlu1 %2922, %v3376_v34  }
  0x74   : > { %1220 = vperm.xlu1 %2922, %v3379_v36  }
  0xce   : > { %v492_v20 = vpop.permute.xlu0 %491  ;;  %v824_v28 = vpop.permute.xlu1 %823 }
  0xcf   : > { %2714 = vmatmul.mubr.msk.f32.vlgmr.msra.gmra.mrb[0].mxu1 %vm403_vm0, %v492_v20  ;;  %2716 = vmatmul.mubr.msk.f32.vlgmr.msra.gmra.mrb[2].mxu0 %vm403_vm0, %v492_v20 }
  0xd0   : > { %569 = vmatprep.mubr.f32.mxu1 %v3075_v0  ;;  %646 = vmatprep.mubr.f32.mxu0 %v3075_v0 }
  0xd1   : > { %654 = vmatpush1.msra.mxu1 %v487_v21  ;;  %731 = vmatpush1.msra.mxu0 %v489_v22 }
  0xd2   : > { %v494_v25 = vpop.permute.xlu0 %493  ;;  %2722 = vmatprep.subr.msk.mxu1 %vm840_vm1, %v3311_v23  ;;  %2726 = vmatprep.subr.msk.mxu0 %vm840_vm1, %v3315_v24 }
  0xd3   : > { %2715 = vmatmul.mubr.msk.f32.gmra.mrb[2].mxu1 %vm403_vm0, %v494_v25  ;;  %2717 = vmatmul.mubr.msk.f32.gmra.mrb[4].mxu0 %vm403_vm0, %v494_v25 }
  0xd4   : > { %717 = vmatprep.mubr.f32.mxu1 %v3075_v0  ;;  %794 = vmatprep.mubr.f32.mxu0 %v3075_v0  ;;  %v826_v29 = vpop.permute.xlu1 %825 }
  0xd7   : > { %2718 = vmatmul.mubr.msk.f32.vlgmr.msra.gmra.mrb[4].mxu1 %vm403_vm0, %v492_v20  ;;  %2720 = vmatmul.mubr.msk.f32.vlgmr.msra.gmra.mrb[6].mxu0 %vm403_vm0, %v492_v20 }
  0xd8   : > { %723 = vmatprep.mubr.f32.mxu1 %v3075_v0  ;;  %800 = vmatprep.mubr.f32.mxu0 %v3075_v0 }
  0xd9   : > { %2723 = vmatpush1.msk.msra.mxu1 %vm840_vm1, %v3299_v15  ;;  %2727 = vmatpush1.msk.msra.mxu0 %vm840_vm1, %v3301_v16 }
  0xda   : > { %2730 = vmatprep.subr.msk.mxu1 %vm840_vm1, %v3331_v26  ;;  %2734 = vmatprep.subr.msk.mxu0 %vm840_vm1, %v3335_v27 }
  0xdb   : > { %2719 = vmatmul.mubr.msk.f32.gmra.mrb[6].mxu1 %vm403_vm0, %v494_v25  ;;  %2721 = vmatmul.mubr.msk.f32.gmra.mrb[8].mxu0 %vm403_vm0, %v494_v25 }
  0xdc   : > { %921 = vmatprep.mubr.f32.mxu1 %v3075_v0  ;;  %998 = vmatprep.mubr.f32.mxu0 %v3075_v0 }
  0xdf   : > { %2724 = vmatmul.mubr.msk.f32.vlgmr.msra.gmra.mrb[0].mxu1 %vm835_vm2, %v824_v28  ;;  %2728 = vmatmul.mubr.msk.f32.vlgmr.msra.gmra.mrb[2].mxu0 %vm835_vm2, %v824_v28 }
  0xe0   : > { %927 = vmatprep.mubr.f32.mxu1 %v3075_v0  ;;  %1004 = vmatprep.mubr.f32.mxu0 %v3075_v0 }
  0xe1   : > { %2731 = vmatpush1.msk.msra.mxu1 %vm840_vm1, %v3303_v17  ;;  %2735 = vmatpush1.msk.msra.mxu0 %vm840_vm1, %v3305_v18 }
  0xe3   : > { %2725 = vmatmul.mubr.msk.f32.gmra.mrb[2].mxu1 %vm835_vm2, %v826_v29  ;;  %2729 = vmatmul.mubr.msk.f32.gmra.mrb[4].mxu0 %vm835_vm2, %v826_v29 }
  0xe4   : > { %1075 = vmatprep.mubr.f32.mxu1 %v3075_v0  ;;  %1152 = vmatprep.mubr.f32.mxu0 %v3075_v0  ;;  %v396_v37 = vpop.permute.xlu0 %395 }
  0xe5   : > { %v401_v38 = vpop.permute.xlu1 %400 }
  0xe7   : > { %2732 = vmatmul.mubr.msk.f32.vlgmr.msra.gmra.mrb[4].mxu1 %vm835_vm2, %v824_v28  ;;  %2736 = vmatmul.mubr.msk.f32.vlgmr.msra.gmra.mrb[6].mxu0 %vm835_vm2, %v824_v28 }
  0xe8   : > { %1081 = vmatprep.mubr.f32.mxu1 %v3075_v0  ;;  %1158 = vmatprep.mubr.f32.mxu0 %v3075_v0 }
  0xeb   : > { %2733 = vmatmul.mubr.msk.f32.gmra.mrb[6].mxu1 %vm835_vm2, %v826_v29  ;;  %2737 = vmatmul.mubr.msk.f32.gmra.mrb[8].mxu0 %vm835_vm2, %v826_v29 }
  0xec   : > { %1292 = vmatprep.mubr.f32.mxu1 %v3075_v0  ;;  %1369 = vmatprep.mubr.f32.mxu0 %v3075_v0 }
 0x132   : > { %v2785_v30 = vpop.f32.mrb[0].mxu0 }
 0x133   : > { %v474_v31 = vpop.f32.mrb[1].mxu0  ;;  %v480_v48 = vadd.f32 %v2785_v30, %v401_v38 }
 0x134   : > { %v475_v39 = vadd.f32 %v474_v31, %v396_v37 }
 0x1b2   : > { %v923_v40 = vpop.f32.mrb[0].mxu1  ;;  %v1000_v41 = vpop.f32.mrb[2].mxu0 }
 0x1b3   : > { %v2802_v42 = vadd.f32 %v923_v40, %v475_v39  ;;  %v2806_v43 = vadd.f32 %v1000_v41, %v475_v39  ;;  %v925_v44 = vpop.f32.mrb[1].mxu1  ;;  %v1002_v45 = vpop.f32.mrb[3].mxu0 }
 0x1b4   : > { %v2803_v46 = vadd.f32 %v925_v44, %v475_v39  ;;  %v2807_v47 = vadd.f32 %v1002_v45, %v475_v39 }
 0x1b5   : > { %v1181_v49 = vmul.f32 0.1, %v2802_v42  ;;  %v1183_v50 = vmul.f32 0.1, %v2806_v43 }
 0x1b6   : > { %v1182_v51 = vmul.f32 0.1, %v2803_v46  ;;  %v1184_v52 = vmul.f32 0.1, %v2807_v47  ;;  %v929_v53 = vpop.f32.mrb[2].mxu1  ;;  %v1006_v54 = vpop.f32.mrb[4].mxu0 }
 0x1b7   : > { %v2804_v55 = vadd.f32 %v929_v53, %v480_v48  ;;  %v2808_v56 = vadd.f32 %v1006_v54, %v480_v48  ;;  %v931_v57 = vpop.f32.mrb[3].mxu1  ;;  %v1008_v58 = vpop.f32.mrb[5].mxu0  ;;  %v1197_v61 = vmax.f32 %v2802_v42, %v1181_v49  ;;  %v1199_v62 = vmax.f32 %v2806_v43, %v1183_v50 }
 0x1b8   : > { %v2805_v59 = vadd.f32 %v931_v57, %v480_v48  ;;  %v2809_v60 = vadd.f32 %v1008_v58, %v480_v48  ;;  %v1198_v2 = vmax.f32 %v2803_v46, %v1182_v51  ;;  %v1200_v3 = vmax.f32 %v2807_v47, %v1184_v52 }
 0x1b9   : > { %v1189_v63 = vmul.f32 0.1, %v2804_v55  ;;  %v1191_v1 = vmul.f32 0.1, %v2808_v56 }
 0x1ba   : > { %v1190_v4 = vmul.f32 0.1, %v2805_v59  ;;  %v1192_v5 = vmul.f32 0.1, %v2809_v60  ;;  %v1077_v6 = vpop.f32.mrb[4].mxu1  ;;  %v1154_v7 = vpop.f32.mrb[6].mxu0 }
 0x1bb   : > { %v1205_v8 = vmax.f32 %v2804_v55, %v1189_v63  ;;  %v1207_v9 = vmax.f32 %v2808_v56, %v1191_v1  ;;  %v2810_v10 = vadd.f32 %v1077_v6, %v475_v39  ;;  %v2814_v11 = vadd.f32 %v1154_v7, %v475_v39  ;;  %v1079_v12 = vpop.f32.mrb[5].mxu1  ;;  %v1156_v13 = vpop.f32.mrb[7].mxu0 }
 0x1bc   : > { %v1206_v14 = vmax.f32 %v2805_v59, %v1190_v4  ;;  %v1208_v19 = vmax.f32 %v2809_v60, %v1192_v5  ;;  %v2811_v20 = vadd.f32 %v1079_v12, %v475_v39  ;;  %v2815_v21 = vadd.f32 %v1156_v13, %v475_v39  ;;  %v1571_v6 = vpop.permute.xlu1 %1570 }
 0x1bd   : > { %v2788_v22 = vpack.c.bf16 %v1205_v8, %v1197_v61  ;;  %v2792_v25 = vpack.c.bf16 %v1207_v9, %v1199_v62  ;;  %v1185_v33 = vmul.f32 0.1, %v2810_v10  ;;  %v1187_v35 = vmul.f32 0.1, %v2814_v11 }
 0x1be   : > { %v1083_v28 = vpop.f32.mrb[6].mxu1  ;;  %v1160_v29 = vpop.f32.mrb[8].mxu0  ;;  %v2786_v30 = vpack.c.bf16 %v1206_v14, %v1198_v2  ;;  %v2790_v31 = vpack.c.bf16 %v1208_v19, %v1200_v3  ;;  %v1186_v42 = vmul.f32 0.1, %v2811_v20  ;;  %v1188_v43 = vmul.f32 0.1, %v2815_v21 }
 0x1bf   : > { %v2812_v37 = vadd.f32 %v1083_v28, %v480_v48  ;;  %v2816_v38 = vadd.f32 %v1160_v29, %v480_v48  ;;  %v1085_v40 = vpop.f32.mrb[7].mxu1  ;;  %v1162_v41 = vpop.f32.mrb[9].mxu0  ;;  %v1201_v50 = vmax.f32 %v2810_v10, %v1185_v33  ;;  %v1203_v51 = vmax.f32 %v2814_v11, %v1187_v35 }
 0x1c0   : > { %v2813_v44 = vadd.f32 %v1085_v40, %v480_v48  ;;  %v2817_v45 = vadd.f32 %v1162_v41, %v480_v48  ;;  %2787 = vmatprep.subr.bf16.mxu1 %v2786_v30  ;;  %2791 = vmatprep.subr.bf16.mxu0 %v2790_v31  ;;  %v1202_v54 = vmax.f32 %v2811_v20, %v1186_v42 }
 0x1c1   : > { %v1193_v46 = vmul.f32 0.1, %v2812_v37  ;;  %v1195_v47 = vmul.f32 0.1, %v2816_v38  ;;  %2789 = vmatpush1.bf16.msra.mxu1 %v2788_v22  ;;  %2793 = vmatpush1.bf16.msra.mxu0 %v2792_v25  ;;  %v1204_v55 = vmax.f32 %v2815_v21, %v1188_v43  ;;  %v379_v43 = vld [vmem:[#allocation5 + $0x38] sm:$0xff] }
 0x1c2   : > { %v1194_v39 = vmul.f32 0.1, %v2813_v44  ;;  %v1196_v49 = vmul.f32 0.1, %v2817_v45 }
 0x1c3   : > { %v1209_v52 = vmax.f32 %v2812_v37, %v1193_v46  ;;  %v1211_v53 = vmax.f32 %v2816_v38, %v1195_v47 }
 0x1c4   : > { %v1210_v56 = vmax.f32 %v2813_v44, %v1194_v39  ;;  %v1212_v57 = vmax.f32 %v2817_v45, %v1196_v49  ;;  %2738 = vmatmul.mubr.msk.f32.vlgmr.msra.gmra.mrb[8].mxu1 %vm1223_vm3, %v3376_v34  ;;  %2740 = vmatmul.mubr.msk.f32.vlgmr.msra.gmra.mrb[10].mxu0 %vm1223_vm3, %v3376_v34 }
 0x1c5   : > { %v2796_v48 = vpack.c.bf16 %v1209_v52, %v1201_v50  ;;  %v2800_v58 = vpack.c.bf16 %v1211_v53, %v1203_v51  ;;  %1298 = vmatprep.mubr.f32.mxu1 %v3075_v0  ;;  %1375 = vmatprep.mubr.f32.mxu0 %v3075_v0 }
 0x1c6   : > { %v2794_v59 = vpack.c.bf16 %v1210_v56, %v1202_v54  ;;  %v2798_v60 = vpack.c.bf16 %v1212_v57, %v1204_v55 }
 0x1c8   : > { %2739 = vmatmul.mubr.msk.f32.gmra.mrb[10].mxu1 %vm1223_vm3, %v3379_v36  ;;  %2795 = vmatprep.subr.bf16.mxu1 %v2794_v59 }
 0x1c9   : > { %2741 = vmatmul.mubr.msk.f32.gmra.mrb[12].mxu0 %vm1223_vm3, %v3379_v36  ;;  %2799 = vmatprep.subr.bf16.mxu0 %v2798_v60 }
 0x1ca   : > { %2797 = vmatpush1.bf16.msra.mxu1 %v2796_v48  ;;  %2801 = vmatpush1.bf16.msra.mxu0 %v2800_v58 }
 0x1cb   : > { %1446 = vmatprep.mubr.f32.mxu1 %v3075_v0  ;;  %1523 = vmatprep.mubr.f32.mxu0 %v3075_v0 }
 0x1cc   : > { %2746 = vmatprep.subr.msk.mxu1 %vm840_vm1, %v3311_v23  ;;  %2749 = vmatprep.subr.msk.mxu0 %vm840_vm1, %v3315_v24 }
 0x1cd   : > { %2742 = vmatmul.mubr.msk.f32.vlgmr.msra.gmra.mrb[12].mxu1 %vm1223_vm3, %v3376_v34  ;;  %2744 = vmatmul.mubr.msk.f32.vlgmr.msra.gmra.mrb[14].mxu0 %vm1223_vm3, %v3376_v34 }
 0x1ce   : > { %1452 = vmatprep.mubr.f32.mxu1 %v3075_v0  ;;  %1529 = vmatprep.mubr.f32.mxu0 %v3075_v0 }
 0x1cf   : > { %2747 = vmatpush1.msk.msra.mxu1 %vm840_vm1, %v3299_v15  ;;  %2750 = vmatpush1.msk.msra.mxu0 %vm840_vm1, %v3301_v16  ;;  %v377_v15 = vld [vmem:[#allocation5 + $0x28] sm:$0xff]  ;;  %v3081_v16 = vmov 8  }
 0x1d0   : > { %2752 = vmatprep.subr.msk.mxu1 %vm840_vm1, %v3331_v26  ;;  %2755 = vmatprep.subr.msk.mxu0 %vm840_vm1, %v3335_v27 }
 0x1d1   : > { %2743 = vmatmul.mubr.msk.f32.gmra.mrb[14].mxu1 %vm1223_vm3, %v3379_v36  ;;  %2745 = vmatmul.mubr.msk.f32.gmra.mrb[16].mxu0 %vm1223_vm3, %v3379_v36 }
 0x1d2   : > { %1639 = vmatprep.mubr.f32.mxu1 %v3075_v0  ;;  %1710 = vmatprep.mubr.f32.mxu0 %v3075_v0 }
 0x1d3   : > { %2921 = vset.pattern.permute.xlu0 %v3081_v16  ;;  %2923 = vset.pattern.permute.xlu1 %v3081_v16 }
 0x1d4   : > { %1869 = vperm.xlu0 %2921, %v377_v15   ;;  %2173 = vperm.xlu1 %2923, %v379_v43  }
 0x1d5   : > { %2748 = vmatmul.mubr.msk.f32.vlgmr.msra.gmra.mrb[16].mxu1 %vm835_vm2, %v3373_v32  ;;  %2751 = vmatmul.mubr.msk.f32.vlgmr.msra.gmra.mrb[18].mxu0 %vm835_vm2, %v3373_v32 }
 0x1d6   : > { %2753 = vmatpush1.msk.msra.mxu1 %vm840_vm1, %v3303_v17  ;;  %1781 = vmatprep.mubr.f32.mxu1 %v3075_v0  ;;  %v3434_v17 = vld [vmem:[#allocation5 + $0x30] sm:$0xff] }
 0x1d7   : > { %2756 = vmatpush1.msk.msra.mxu0 %vm840_vm1, %v3305_v18  ;;  %1852 = vmatprep.mubr.f32.mxu0 %v3075_v0 }
 0x1d8   : > { %2168 = vperm.xlu0 %2921, %v3434_v17  }
 0x1d9   : > { %2754 = vmatmul.mubr.msk.f32.vlgmr.msra.gmra.mrb[18].mxu1 %vm835_vm2, %v3373_v32  ;;  %2757 = vmatmul.mubr.msk.f32.vlgmr.msra.gmra.mrb[20].mxu0 %vm835_vm2, %v3373_v32 }
 0x1da   : > { %1938 = vmatprep.mubr.f32.mxu1 %v3075_v0  ;;  %2009 = vmatprep.mubr.f32.mxu0 %v3075_v0 }
 0x253   : > { %v1870_v44 = vpop.permute.xlu0 %1869 }
 0x297   : > { %v3437_v18 = vpop.f32.mrb[8].mxu1  ;;  %v3441_v24 = vpop.f32.mrb[10].mxu0 }
 0x298   : > { %v3439_v23 = vpop.f32.mrb[9].mxu1  ;;  %v3443_v26 = vpop.f32.mrb[11].mxu0 }
 0x29b   : > { %v3445_v27 = vpop.f32.mrb[10].mxu1 }
 0x29c   : > { %v3447_v32 = vpop.f32.mrb[11].mxu1  ;;  %v3449_v34 = vpop.f32.mrb[12].mxu0 }
 0x29d   : > { %v3451_v36 = vpop.f32.mrb[13].mxu0 }
 0x2a0   : > { %v3453_v61 = vpop.f32.mrb[12].mxu1  ;;  %v3455_v62 = vpop.f32.mrb[14].mxu0 }
 0x2a1   : > { %v3457_v63 = vpop.f32.mrb[13].mxu1  ;;  %v3459_v1 = vpop.f32.mrb[15].mxu0 }
 0x2a4   : > { %v3461_v2 = vpop.f32.mrb[14].mxu1  ;;  %v3463_v3 = vpop.f32.mrb[16].mxu0 }
 0x2a5   : > { %v3465_v4 = vpop.f32.mrb[15].mxu1  ;;  %v3467_v5 = vpop.f32.mrb[17].mxu0 }
 0x2a8   : > { %v1641_v7 = vpop.f32.mrb[16].mxu1  ;;  %v1712_v8 = vpop.f32.mrb[18].mxu0 }
 0x2a9   : > { %v1642_v9 = vadd.f32 %v1641_v7, %v1571_v6  ;;  %v1713_v10 = vadd.f32 %v1712_v8, %v1571_v6  ;;  %v1643_v11 = vpop.f32.mrb[17].mxu1  ;;  %v1714_v12 = vpop.f32.mrb[19].mxu0 }
 0x2aa   : > { %v1644_v13 = vadd.f32 %v1643_v11, %v1571_v6  ;;  %v1715_v14 = vadd.f32 %v1714_v12, %v1571_v6  ;;  %v1216_v11 = vpop.permute.xlu1 %1215 }
 0x2ab   : > { %v1861_v19 = vmax.f32 %v1713_v10, 0.0  ;;  %v1859_v28 = vmax.f32 %v1642_v9, 0.0 }
 0x2ac   : > { %v1860_v20 = vmax.f32 %v1644_v13, 0.0  ;;  %v1862_v21 = vmax.f32 %v1715_v14, 0.0  ;;  %v1783_v22 = vpop.f32.mrb[18].mxu1  ;;  %v1854_v25 = vpop.f32.mrb[20].mxu0  ;;  %v1295_v13 = vadd.f32 %v3437_v18, %v1216_v11  ;;  %v3497_v14 = vadd.f32 %v3439_v23, %v1216_v11 }
 0x2ad   : > { %v1784_v29 = vadd.f32 %v1783_v22, %v1571_v6  ;;  %v1855_v30 = vadd.f32 %v1854_v25, %v1571_v6  ;;  %v1785_v31 = vpop.f32.mrb[19].mxu1  ;;  %v1856_v33 = vpop.f32.mrb[21].mxu0  ;;  %v3514_v18 = vadd.f32 %v3453_v61, %v1216_v11  ;;  %v3517_v23 = vadd.f32 %v3455_v62, %v1216_v11 }
 0x2ae   : > { %v1786_v35 = vadd.f32 %v1785_v31, %v1571_v6  ;;  %v1857_v37 = vadd.f32 %v1856_v33, %v1571_v6  ;;  %1874 = vmatprep.subr.mxu1 %v1860_v20  ;;  %1945 = vmatprep.subr.mxu0 %v1862_v21  ;;  %v1221_v12 = vpop.permute.xlu1 %1220 }
 0x2af   : > { %1875 = vmatpush1.msra.mxu1 %v1859_v28  ;;  %1946 = vmatpush1.msra.mxu0 %v1861_v19  ;;  %v1863_v41 = vmax.f32 %v1784_v29, 0.0  ;;  %v1865_v42 = vmax.f32 %v1855_v30, 0.0  ;;  %v1372_v19 = vadd.f32 %v3441_v24, %v1216_v11  ;;  %v3501_v20 = vadd.f32 %v3445_v27, %v1221_v12 }
 0x2b0   : > { %v1864_v38 = vmax.f32 %v1786_v35, 0.0  ;;  %v1866_v40 = vmax.f32 %v1857_v37, 0.0  ;;  %2758 = vmatmul.mubr.msk.f32.vlgmr.msra.gmra.mrb[20].mxu1 %vm403_vm0, %v377_v15  ;;  %2759 = vmatmul.mubr.msk.f32.vlgmr.msra.gmra.mrb[22].mxu0 %vm403_vm0, %v377_v15  ;;  %v3508_v21 = vadd.f32 %v3449_v34, %v1221_v12  ;;  %v3511_v22 = vadd.f32 %v3451_v36, %v1221_v12 }
 0x2b1   : > { %2080 = vmatprep.mubr.f32.mxu1 %v3075_v0  ;;  %2151 = vmatprep.mubr.f32.mxu0 %v3075_v0  ;;  %v1536_v24 = vmul.f32 0.1, %v1295_v13  ;;  %v1537_v27 = vmul.f32 0.1, %v3497_v14  ;;  %v3524_v25 = vmul.f32 0.1, %v3501_v20  ;;  %v3527_v36 = vadd.f32 %v3459_v1, %v1216_v11 }
 0x2b2   : > { %2016 = vmatprep.subr.mxu1 %v1864_v38  ;;  %2087 = vmatprep.subr.mxu0 %v1866_v40  ;;  %v1546_v62 = vmul.f32 0.1, %v3508_v21  ;;  %v3534_v28 = vmul.f32 0.1, %v3511_v22  ;;  %v3537_v29 = vmul.f32 0.1, %v3514_v18  ;;  %v2169_v40 = vpop.permute.xlu0 %2168 }
 0x2b3   : > { %2017 = vmatpush1.msra.mxu1 %v1863_v41  ;;  %2088 = vmatpush1.msra.mxu0 %v1865_v42  ;;  %v1552_v30 = vmax.f32 %v1295_v13, %v1536_v24  ;;  %v1553_v31 = vmax.f32 %v3497_v14, %v1537_v27  ;;  %v1560_v35 = vmax.f32 %v3501_v20, %v3524_v25  ;;  %v3549_v38 = vmul.f32 0.1, %v3527_v36 }
 0x2b4   : > { %2760 = vmatmul.mubr.msk.f32.vlgmr.msra.gmra.mrb[22].mxu1 %vm403_vm0, %v377_v15  ;;  %2761 = vmatmul.mubr.msk.f32.vlgmr.msra.gmra.mrb[24].mxu0 %vm403_vm0, %v377_v15  ;;  %v1562_v42 = vmax.f32 %v3508_v21, %v1546_v62 }
 0x2b5   : > { %2244 = vmatprep.mubr.f32.mxu1 %v3075_v0  ;;  %2321 = vmatprep.mubr.f32.mxu0 %v3075_v0 }
 0x383   : > { %v1940_v45 = vpop.f32.mrb[20].mxu1  ;;  %v2011_v46 = vpop.f32.mrb[22].mxu0 }
 0x384   : > { %v1941_v47 = vadd.f32 %v1940_v45, %v1870_v44  ;;  %v2012_v39 = vadd.f32 %v2011_v46, %v1870_v44  ;;  %v1942_v49 = vpop.f32.mrb[21].mxu1  ;;  %v2013_v50 = vpop.f32.mrb[23].mxu0 }
 0x385   : > { %v1943_v51 = vadd.f32 %v1942_v49, %v1870_v44  ;;  %v2014_v52 = vadd.f32 %v2013_v50, %v1870_v44 }
 0x386   : > { %v2160_v53 = vmax.f32 %v2012_v39, 0.0  ;;  %v2158_v48 = vmax.f32 %v1941_v47, 0.0  ;;  %v1556_v47 = vmax.f32 %v3514_v18, %v3537_v29 }
 0x387   : > { %v2159_v54 = vmax.f32 %v1943_v51, 0.0  ;;  %v2161_v55 = vmax.f32 %v2014_v52, 0.0  ;;  %v2082_v56 = vpop.f32.mrb[22].mxu1  ;;  %v2153_v57 = vpop.f32.mrb[24].mxu0 }
 0x388   : > { %v2083_v58 = vadd.f32 %v2082_v56, %v1870_v44  ;;  %v2154_v59 = vadd.f32 %v2153_v57, %v1870_v44  ;;  %v2084_v60 = vpop.f32.mrb[23].mxu1  ;;  %v2155_v15 = vpop.f32.mrb[25].mxu0  ;;  %v1559_v57 = vmax.f32 %v3527_v36, %v3549_v38 }
 0x389   : > { %v2085_v16 = vadd.f32 %v2084_v60, %v1870_v44  ;;  %v2156_v6 = vadd.f32 %v2155_v15, %v1870_v44  ;;  %2180 = vmatprep.subr.mxu1 %v2159_v54  ;;  %2257 = vmatprep.subr.mxu0 %v2161_v55  ;;  %v3557_v44 = vadd.f32 %v3461_v2, %v1221_v12  ;;  %v3568_v56 = vpop.permute.xlu1 %2173 }
 0x38a   : > { %2181 = vmatpush1.msra.mxu1 %v2158_v48  ;;  %2258 = vmatpush1.msra.mxu0 %v2160_v53  ;;  %v2162_v9 = vmax.f32 %v2083_v58, 0.0  ;;  %v2164_v10 = vmax.f32 %v2154_v59, 0.0  ;;  %v3566_v54 = vadd.f32 %v3463_v3, %v1221_v12  ;;  %v3573_v48 = vadd.f32 %v3465_v4, %v1221_v12 }
 0x38b   : > { %v2163_v7 = vmax.f32 %v2085_v16, 0.0  ;;  %v2165_v8 = vmax.f32 %v2156_v6, 0.0  ;;  %2762 = vmatmul.mubr.msk.f32.vlgmr.msra.gmra.mrb[24].mxu1 %vm403_vm0, %v3434_v17  ;;  %2764 = vmatmul.mubr.msk.f32.vlgmr.msra.gmra.mrb[26].mxu0 %vm403_vm0, %v3434_v17  ;;  %v3576_v60 = vmul.f32 0.1, %v3557_v44  ;;  %v3579_v15 = vadd.f32 %v3467_v5, %v1221_v12 }
 0x38c   : > { %2250 = vmatprep.mubr.f32.mxu1 %v3075_v0  ;;  %2327 = vmatprep.mubr.f32.mxu0 %v3075_v0  ;;  %v1549_v5 = vmul.f32 0.1, %v3573_v48 }
 0x38d   : > { %2334 = vmatprep.subr.mxu1 %v2163_v7  ;;  %2411 = vmatprep.subr.mxu0 %v2165_v8 }
 0x38e   : > { %2335 = vmatpush1.msra.mxu1 %v2162_v9  ;;  %2412 = vmatpush1.msra.mxu0 %v2164_v10 }
 0x38f   : > { %2763 = vmatmul.mubr.msk.f32.gmra.mrb[26].mxu1 %vm403_vm0, %v379_v43  ;;  %2765 = vmatmul.mubr.msk.f32.gmra.mrb[28].mxu0 %vm403_vm0, %v379_v43 }
 0x390   : > { %2398 = vmatprep.mubr.f32.mxu1 %v3075_v0  ;;  %2475 = vmatprep.mubr.f32.mxu0 %v3075_v0 }
 0x393   : > { %2766 = vmatmul.mubr.msk.f32.vlgmr.msra.gmra.mrb[28].mxu1 %vm403_vm0, %v3434_v17  ;;  %2768 = vmatmul.mubr.msk.f32.vlgmr.msra.gmra.mrb[30].mxu0 %vm403_vm0, %v3434_v17  ;;  %v1374_v17 = vadd.f32 %v3443_v26, %v1216_v11  ;;  %v3521_v26 = vadd.f32 %v3457_v63, %v1216_v11  ;;  %v3540_v63 = vmul.f32 0.1, %v3517_v23 }
 0x394   : > { %2404 = vmatprep.mubr.f32.mxu1 %v3075_v0  ;;  %2481 = vmatprep.mubr.f32.mxu0 %v3075_v0  ;;  %v3505_v0 = vadd.f32 %v3447_v32, %v1221_v12  ;;  %v1538_v32 = vmul.f32 0.1, %v1372_v19  ;;  %v1550_v12 = vmul.f32 0.1, %v3566_v54 }
 0x395   : > { %v1539_v34 = vmul.f32 0.1, %v1374_v17  ;;  %v3544_v1 = vmul.f32 0.1, %v3521_v26  ;;  %v1558_v39 = vmax.f32 %v3517_v23, %v3540_v63 }
 0x396   : > { %v3530_v61 = vmul.f32 0.1, %v3505_v0  ;;  %v1554_v33 = vmax.f32 %v1372_v19, %v1538_v32  ;;  %v1566_v38 = vmax.f32 %v3566_v54, %v1550_v12 }
 0x397   : > { %2767 = vmatmul.mubr.msk.f32.gmra.mrb[30].mxu1 %vm403_vm0, %v379_v43  ;;  %2769 = vmatmul.mubr.msk.f32.gmra.mrb[32].mxu0 %vm403_vm0, %v379_v43  ;;  %v1555_v37 = vmax.f32 %v1374_v17, %v1539_v34  ;;  %v1563_v43 = vmax.f32 %v3511_v22, %v3534_v28  ;;  %v1557_v53 = vmax.f32 %v3521_v26, %v3544_v1  ;;  %v1551_v22 = vmul.f32 0.1, %v3579_v15 }
 0x398   : > { %v1561_v41 = vmax.f32 %v3505_v0, %v3530_v61 }
 0x45e   : > { %v2246_v45 = vpop.f32.mrb[24].mxu1  ;;  %v2323_v46 = vpop.f32.mrb[26].mxu0 }
 0x45f   : > { %v2247_v49 = vadd.f32 %v2246_v45, %v2169_v40  ;;  %v2324_v50 = vadd.f32 %v2323_v46, %v2169_v40  ;;  %v2248_v51 = vpop.f32.mrb[25].mxu1  ;;  %v2325_v52 = vpop.f32.mrb[27].mxu0 }
 0x460   : > { %v2249_v2 = vadd.f32 %v2248_v51, %v2169_v40  ;;  %v2326_v55 = vadd.f32 %v2325_v52, %v2169_v40 }
 0x461   : > { %v2488_v58 = vmax.f32 %v2247_v49, 0.0  ;;  %v2490_v59 = vmax.f32 %v2324_v50, 0.0 }
 0x462   : > { %v2489_v3 = vmax.f32 %v2249_v2, 0.0  ;;  %v2491_v16 = vmax.f32 %v2326_v55, 0.0  ;;  %v2252_v6 = vpop.f32.mrb[26].mxu1  ;;  %v2329_v7 = vpop.f32.mrb[28].mxu0 }
 0x463   : > { %v2504_v8 = vmul.f32 %v2488_v58, %v1552_v30  ;;  %v2506_v9 = vmul.f32 %v2490_v59, %v1554_v33  ;;  %v2253_v10 = vadd.f32 %v2252_v6, %v3568_v56  ;;  %v2330_v11 = vadd.f32 %v2329_v7, %v3568_v56  ;;  %v2254_v4 = vpop.f32.mrb[27].mxu1  ;;  %v2331_v13 = vpop.f32.mrb[29].mxu0 }
 0x464   : > { %v2505_v14 = vmul.f32 %v2489_v3, %v1553_v31  ;;  %v2507_v19 = vmul.f32 %v2491_v16, %v1555_v37  ;;  %v2255_v20 = vadd.f32 %v2254_v4, %v3568_v56  ;;  %v2332_v17 = vadd.f32 %v2331_v13, %v3568_v56 }
 0x465   : > { %v2496_v0 = vmax.f32 %v2253_v10, 0.0  ;;  %v2498_v21 = vmax.f32 %v2330_v11, 0.0  ;;  %v1564_v31 = vmax.f32 %v3557_v44, %v3576_v60  ;;  %v1567_v7 = vmax.f32 %v3579_v15, %v1551_v22 }
 0x466   : > { %v2520_v18 = vadd.f32 %v2505_v14, %v2504_v8  ;;  %v2497_v23 = vmax.f32 %v2255_v20, 0.0  ;;  %v2499_v24 = vmax.f32 %v2332_v17, 0.0  ;;  %v2400_v27 = vpop.f32.mrb[28].mxu1  ;;  %v2477_v26 = vpop.f32.mrb[30].mxu0 }
 0x467   : > { %v2512_v32 = vmul.f32 %v2496_v0, %v1560_v35  ;;  %v2514_v25 = vmul.f32 %v2498_v21, %v1562_v42  ;;  %v2401_v34 = vadd.f32 %v2400_v27, %v2169_v40  ;;  %v2478_v36 = vadd.f32 %v2477_v26, %v2169_v40  ;;  %v2402_v61 = vpop.f32.mrb[29].mxu1  ;;  %v2479_v62 = vpop.f32.mrb[31].mxu0 }
 0x468   : > { %v2522_v28 = vadd.f32 %v2520_v18, %v2506_v9  ;;  %v2513_v29 = vmul.f32 %v2497_v23, %v1561_v41  ;;  %v2515_v63 = vmul.f32 %v2499_v24, %v1563_v43  ;;  %v2403_v30 = vadd.f32 %v2402_v61, %v2169_v40 }
 0x469   : > { %v2492_v1 = vmax.f32 %v2401_v34, 0.0  ;;  %v2494_v33 = vmax.f32 %v2478_v36, 0.0  ;;  %v2480_v37 = vadd.f32 %v2479_v62, %v2169_v40 }
 0x46a   : > { %v2524_v45 = vadd.f32 %v2522_v28, %v2507_v19  ;;  %v2521_v46 = vadd.f32 %v2513_v29, %v2512_v32  ;;  %v2493_v35 = vmax.f32 %v2403_v30, 0.0  ;;  %v2406_v42 = vpop.f32.mrb[30].mxu1  ;;  %v2483_v49 = vpop.f32.mrb[32].mxu0 }
 0x46b   : > { %v2508_v50 = vmul.f32 %v2492_v1, %v1556_v47  ;;  %v2510_v51 = vmul.f32 %v2494_v33, %v1558_v39  ;;  %v2495_v52 = vmax.f32 %v2480_v37, 0.0  ;;  %v2407_v41 = vadd.f32 %v2406_v42, %v3568_v56  ;;  %v2408_v43 = vpop.f32.mrb[31].mxu1  ;;  %v2485_v2 = vpop.f32.mrb[33].mxu0 }
 0x46c   : > { %v2523_v55 = vadd.f32 %v2521_v46, %v2514_v25  ;;  %v2509_v44 = vmul.f32 %v2493_v35, %v1557_v53  ;;  %v2484_v58 = vadd.f32 %v2483_v49, %v3568_v56  ;;  %v2409_v40 = vadd.f32 %v2408_v43, %v3568_v56 }
 0x46d   : > { %v2526_v54 = vadd.f32 %v2524_v45, %v2508_v50  ;;  %v2511_v59 = vmul.f32 %v2495_v52, %v1559_v57  ;;  %v2500_v60 = vmax.f32 %v2407_v41, 0.0  ;;  %v2486_v3 = vadd.f32 %v2485_v2, %v3568_v56 }
 0x46e   : > { %v1565_v47 = vmax.f32 %v3573_v48, %v1549_v5  ;;  %v2525_v16 = vadd.f32 %v2523_v55, %v2515_v63  ;;  %v2502_v39 = vmax.f32 %v2484_v58, 0.0  ;;  %v2501_v6 = vmax.f32 %v2409_v40, 0.0 }
 0x46f   : > { %v2528_v8 = vadd.f32 %v2526_v54, %v2509_v44  ;;  %v2516_v53 = vmul.f32 %v2500_v60, %v1564_v31  ;;  %v2503_v9 = vmax.f32 %v2486_v3, 0.0 }
 0x470   : > { %v2518_v10 = vmul.f32 %v2502_v39, %v1566_v38  ;;  %v2517_v11 = vmul.f32 %v2501_v6, %v1565_v47 }
 0x471   : > { %v2530_v4 = vadd.f32 %v2528_v8, %v2510_v51  ;;  %v2527_v57 = vadd.f32 %v2525_v16, %v2516_v53  ;;  %v2519_v13 = vmul.f32 %v2503_v9, %v1567_v7 }
 0x473   : > { %v2532_v56 = vadd.f32 %v2530_v4, %v2511_v59  ;;  %v2529_v48 = vadd.f32 %v2527_v57, %v2517_v11 }
 0x475   : > { %2534 = vst [vmem:[%s344_s6] sm:$0xff] %v2532_v56  ;;  %v2531_v15 = vadd.f32 %v2529_v48, %v2518_v10 }
 0x477   : > { %v2533_v14 = vadd.f32 %v2531_v15, %v2519_v13 }
 0x479   : > { %2535 = vst [vmem:[%s344_s6 + $0x8] sm:$0xff] %v2533_v14 }
 0x47a   : > { %2996 = shalt.err (!%p2993_p9)
}
 0x47b   : > { %s2997_s12 = scalar_lea.hbm %s3604_s7, 256  ;;  %s3001_s25 = scalar_lea.hbm %s3658_s5, 512 }
 0x47c   : > { %p2998_p1 = scmp.ne.s32.totalorder %s3604_s7, %s2997_s12  ;;  %p3002_p3 = scmp.lt.u32.totalorder %s3604_s7, %s3658_s5 }
 0x47d   : > { %p3003_p4 = scmp.lt.u32.totalorder %s3001_s25, %s2997_s12  ;;  %p3005_p6 = scmp.lt.u32.totalorder %s2997_s12, %s3604_s7 }
 0x47e   : > { %p2999_p2 = pnand %p2998_p1, %p3211_p10 }
 0x47f   : > { %p3004_p13 = por %p3003_p4, %p3002_p3 }
 0x480   : > { %p3000_p7 = pneg %p2999_p2 }
 0x481   : > { %p3006_p8 = por %p3005_p6, %p3004_p13 }
 0x483   : > { %p3007_p12 = pnand %p3006_p8, %p3000_p7 }
 0x485   : > { %3010 = shalt.err (!%p3007_p12)
}
 0x486   : > { %s3083_s28 = smov 128   ;;  %s3084_s26 = smov 8  }
 0x487   : > { %2840 = dma.vmem_to_hbm [thread:$0]  (%p3211_p10), %s3599_s10, 256, %s3604_s7, %s2537_s27, %s3083_s28, %s3083_s28, %s3084_s26  }
 0x488 PF: > { %s2566_s14 = sand.u32 1, %s3049_s18   ;;  %p3676_p11 = scmp.ne.s32.totalorder %s3666_s29, 0 }
 0x489   : > { %p3677_p0 = scmp.ge.s32.totalorder %s3069_s23, 2  ;;  %s2567_s21 = scalar_lea.sflag [#allocation4], %s2566_s14 }
 0x48b   : > { %p2851_p5 = pnand %p3677_p0, %p3676_p11 }
 0x48d   : > { %3044 = dma.done.wait (!%p2851_p5), %s2567_s21, 256  }
 0x48e   : > { %3046 = vsyncadd (!%p2851_p5), %s2567_s21, 4294967040  ;;  %s22_s23 = sadd.s32 1, %s3069_s23   ;;  %s3678_s18 = smov %s3053_s19 }
 0x48f   : > { %p19_p9 = scmp.ge.s32.totalorder %s22_s23, 4   ;;  %s3679_s19 = smov %s3057_s20 }
 0x490   : > { %s3680_s20 = smov %s3220_s15  ;;  %s3681_s21 = smov %s3065_s22 }
 0x491   : > { %s3682_s22 = smov %s3684_s9  ;;  %21 = sbr.rel (!%p19_p9) target bundleno = 7 (0x7), region = 98 }
 0x498   :  { %2572 = vsyncpa [#allocation3], 1 }
 0x499   :  { %2574 = vsyncpa [#allocation3 + $0x1], 1 }
 0x49a   :  { %2575 = vsyncpa [#allocation6], 1 }
 0x49b   :  { %2576 = vsyncpa [#allocation4], 1 }
 0x49c   :  { %2578 = vsyncpa [#allocation4 + $0x1], 1 }

</bundles_post_ra>
